<compile_context>
chip_gen: v7x
topology: tpu7x:2x2x1
jax: 0.10.0
libtpu: 0.0.40
codegen_flags: <defaults>
</compile_context>

<pallas_src>
import math

import jax
import jax.numpy as jnp
from jax.experimental import pallas as pl
from jax.experimental.pallas import tpu as pltpu


def _round_up(x: int, m: int) -> int:
    return ((x + m - 1) // m) * m


def _pick_tb(B: int) -> int:
    """Batch tile: sublane-rounded for tiny B, 256 for big B, >=2 grid steps."""
    if B <= 128:
        return _round_up(B, 8)
    tb = 256
    # Keep at least 2 grid steps so the "parallel" batch axis can feed both
    # v7x TensorCores (grid=(1,) leaves half the chip idle).
    while tb > 128 and _round_up(B, tb) // tb < 2:
        tb //= 2
    return tb


def _resident_spec(shape):
    """BlockSpec with a constant index_map, single-buffered (no double-buffer)."""
    try:
        return pl.BlockSpec(shape, lambda i: (0, 0), pipeline_mode=pl.Buffered(1))
    except TypeError:  # older jax without pipeline_mode support
        return pl.BlockSpec(shape, lambda i: (0, 0))


# -----------------------------------------------------------------------------
# Kernel
# -----------------------------------------------------------------------------
def lstm_cell_kernel(a_ref, w_ref, b_ref, cx_ref, hy_ref, cy_ref):
    # gates = [x | hx] @ [Wx^T ; Wh^T] + (bx + bh)   (f32 accumulation)
    gates = (
        jnp.dot(a_ref[...], w_ref[...], preferred_element_type=jnp.float32)
        + b_ref[...]
    )

    H = hy_ref.shape[1]  # padded hidden size (multiple of 128) -> aligned slices

    def sigmoid_t(z):
        # sigmoid(z) = 0.5 * (tanh(0.5*z) + 1): one EUP op per element,
        # mul/add fill spare VPU slots.
        return 0.5 * (jnp.tanh(0.5 * z) + 1.0)

    ingate     = sigmoid_t(gates[:, 0 * H:1 * H])
    forgetgate = sigmoid_t(gates[:, 1 * H:2 * H])
    cellgate   = jnp.tanh(gates[:, 2 * H:3 * H])
    outgate    = sigmoid_t(gates[:, 3 * H:4 * H])

    cx = cx_ref[...].astype(jnp.float32)
    cy = cx * forgetgate + ingate * cellgate
    hy = outgate * jnp.tanh(cy)

    cy_ref[...] = cy.astype(cy_ref.dtype)
    hy_ref[...] = hy.astype(hy_ref.dtype)


# -----------------------------------------------------------------------------
# One-time parameter packing (hoisted out of the per-step path)
# -----------------------------------------------------------------------------
def pack_lstm_params(wx_t, wh_t, bx, bh, mxu_dtype=jnp.bfloat16):
    """Pack [Wx^T ; Wh^T] into one lane-aligned (Kp, 4*Hp) weight in mxu_dtype
    and fold both biases into one f32 (1, 4*Hp) bias.  Call once, reuse."""
    I, G = wx_t.shape
    H = G // 4
    Hp = _round_up(H, 128)
    K = I + H
    Kp = _round_up(K, 128)

    b32 = (bx.astype(jnp.float32) + bh.astype(jnp.float32)).reshape(1, 4 * H)

    if Hp == H:
        w = jnp.concatenate([wx_t, wh_t], axis=0)
        if Kp != K:
            w = jnp.concatenate(
                [w, jnp.zeros((Kp - K, 4 * H), w.dtype)], axis=0)
        b = b32
    else:
        # Per-gate column padding H -> Hp so gate slices stay lane-aligned.
        w = jnp.zeros((Kp, 4 * Hp), wx_t.dtype)
        b = jnp.zeros((1, 4 * Hp), jnp.float32)
        for g in range(4):
            w = w.at[:I, g * Hp:g * Hp + H].set(wx_t[:, g * H:(g + 1) * H])
            w = w.at[I:I + H, g * Hp:g * Hp + H].set(wh_t[:, g * H:(g + 1) * H])
            b = b.at[:, g * Hp:g * Hp + H].set(b32[:, g * H:(g + 1) * H])

    return dict(
        w=w.astype(mxu_dtype),          # MXU operand dtype (bf16 by default)
        b=b.astype(jnp.float32),        # bias stays f32 (tiny; exact add)
        I=I, H=H, Hp=Hp, K=K, Kp=Kp,
        mxu_dtype=mxu_dtype,
    )


# -----------------------------------------------------------------------------
# Per-step wrapper
# -----------------------------------------------------------------------------
def lstm_cell(x, hx, cx, packed):
    """Pallas LSTM cell.  x: (B, I), hx/cx: (B, H).  Returns (hy, cy)."""
    B, I = x.shape
    H, Hp, K, Kp = packed["H"], packed["Hp"], packed["K"], packed["Kp"]
    assert I == packed["I"] and hx.shape[1] == H and cx.shape[1] == H
    dtype = x.dtype
    mxu_dtype = packed["mxu_dtype"]
    mxu_isz = jnp.dtype(mxu_dtype).itemsize
    state_isz = jnp.dtype(dtype).itemsize

    TB = _pick_tb(B)
    Bp = _round_up(B, TB)
    grid = (Bp // TB,)

    # Fused activations [x | hx] in the MXU dtype; skip padding when aligned.
    if Bp == B and Kp == K:
        a = jnp.concatenate(
            [x.astype(mxu_dtype), hx.astype(mxu_dtype)], axis=1)
    else:
        a = jnp.zeros((Bp, Kp), mxu_dtype)
        a = a.at[:B, :I].set(x.astype(mxu_dtype))
        a = a.at[:B, I:I + H].set(hx.astype(mxu_dtype))

    if Bp == B and Hp == H:
        cxp = cx
    else:
        cxp = jnp.zeros((Bp, Hp), dtype).at[:B, :H].set(cx)

    # ---- Specs -------------------------------------------------------------
    in_specs = [
        pl.BlockSpec((TB, Kp), lambda i: (i, 0)),      # fused activations
        _resident_spec((Kp, 4 * Hp)),                  # weights, single-buffered
        _resident_spec((1, 4 * Hp)),                   # bias,    single-buffered
        pl.BlockSpec((TB, Hp), lambda i: (i, 0)),      # cx
    ]
    out_specs = (
        pl.BlockSpec((TB, Hp), lambda i: (i, 0)),      # hy
        pl.BlockSpec((TB, Hp), lambda i: (i, 0)),      # cy
    )
    out_shape = (
        jax.ShapeDtypeStruct((Bp, Hp), dtype),
        jax.ShapeDtypeStruct((Bp, Hp), dtype),
    )

    # ---- Honest VMEM budget, generation-aware cap ---------------------------
    resident = Kp * 4 * Hp * mxu_isz + 4 * Hp * 4              # 1-buffered w + f32 b
    per_step = (
        2 * TB * Kp * mxu_isz                                  # 2x activation tile
        + 2 * TB * Hp * state_isz                              # 2x cx tile
        + 2 * 2 * TB * Hp * state_isz                          # 2x hy + 2x cy tiles
        + TB * 4 * Hp * 4                                      # f32 gates intermediate
        + 4 * TB * Hp * 4                                      # elementwise temporaries
    )
    needed = resident + per_step
    try:
        cap = int(pltpu.get_tpu_info().vmem_capacity_bytes)
    except Exception:  # conservative fallback (v7x-sized)
        cap = 64 * 2 ** 20
    usable = cap - cap // 8          # ~112 MiB on v5e/v6e, ~56 MiB on v7x
    vmem_limit = int(min(usable, max(32 * 2 ** 20, 2 * needed)))

    cost = pl.CostEstimate(
        flops=2 * Bp * Kp * 4 * Hp + 10 * Bp * Hp,
        transcendentals=5 * Bp * Hp,
        bytes_accessed=(Bp * Kp * mxu_isz + Kp * 4 * Hp * mxu_isz
                        + 4 * Hp * 4 + 3 * Bp * Hp * state_isz),
    )

    hy_p, cy_p = pl.pallas_call(
        lstm_cell_kernel,
        out_shape=out_shape,
        grid=grid,
        in_specs=in_specs,
        out_specs=out_specs,
        compiler_params=pltpu.CompilerParams(
            dimension_semantics=("parallel",),
            vmem_limit_bytes=vmem_limit,
        ),
        cost_estimate=cost,
    )(a, packed["w"], packed["b"], cxp)

    if Bp == B and Hp == H:
        return hy_p, cy_p
    return hy_p[:B, :H], cy_p[:B, :H]


# -----------------------------------------------------------------------------
# Pure-JAX reference (matches the PyTorch LSTMCell forward)
# -----------------------------------------------------------------------------
def lstm_cell_ref(x, hx, cx, wx_t, wh_t, bx, bh):
    gates = x @ wx_t + bx + hx @ wh_t + bh
    H = hx.shape[1]
    i = jax.nn.sigmoid(gates[:, 0 * H:1 * H])
    f = jax.nn.sigmoid(gates[:, 1 * H:2 * H])
    g = jnp.tanh(gates[:, 2 * H:3 * H])
    o = jax.nn.sigmoid(gates[:, 3 * H:4 * H])
    cy = cx * f + i * g
    hy = o * jnp.tanh(cy)
    return hy, cy


def _run_check(B, I, H, seed, mxu_dtype, atol, rtol):
    dtype = jnp.float32
    key = jax.random.PRNGKey(seed)
    kx, khx, kcx, kwx, kwh, kbx, kbh = jax.random.split(key, 7)

    # uniform(-std, std) with std = 1/sqrt(hidden_size), as in reset_parameters()
    std = 1.0 / math.sqrt(H)
    wx_t = jax.random.uniform(kwx, (I, 4 * H), dtype, minval=-std, maxval=std)
    wh_t = jax.random.uniform(kwh, (H, 4 * H), dtype, minval=-std, maxval=std)
    bx = jax.random.uniform(kbx, (1, 4 * H), dtype, minval=-std, maxval=std)
    bh = jax.random.uniform(kbh, (1, 4 * H), dtype, minval=-std, maxval=std)

    x = jax.random.normal(kx, (B, I), dtype)
    hx = jax.random.normal(khx, (B, H), dtype)
    cx = jax.random.normal(kcx, (B, H), dtype)

    packed = pack_lstm_params(wx_t, wh_t, bx, bh, mxu_dtype=mxu_dtype)
    hy, cy = lstm_cell(x, hx, cx, packed)
    jax.block_until_ready((hy, cy))

    hy_ref, cy_ref = lstm_cell_ref(x, hx, cx, wx_t, wh_t, bx, bh)
    assert hy.shape == (B, H) and cy.shape == (B, H)
    assert jnp.allclose(hy, hy_ref, atol=atol, rtol=rtol), "hy mismatch"
    assert jnp.allclose(cy, cy_ref, atol=atol, rtol=rtol), "cy mismatch"


if __name__ == "__main__":
    # Small shape matching the module (batch=8, input=16, hidden=32).
    # f32-MXU path: tight tolerance validates the math end-to-end.
    _run_check(B=8, I=16, H=32, seed=0,
               mxu_dtype=jnp.float32, atol=2e-5, rtol=2e-5)
    # bf16-MXU path (production config): MXU operands in bf16, f32 accumulate;
    # tolerance documented at 3e-2 vs the pure-f32 reference.
    _run_check(B=8, I=16, H=32, seed=0,
               mxu_dtype=jnp.bfloat16, atol=3e-2, rtol=3e-2)
    # Larger ragged batch exercises the multi-step batch grid + padding path.
    _run_check(B=300, I=16, H=32, seed=1,
               mxu_dtype=jnp.bfloat16, atol=3e-2, rtol=3e-2)
    print("KERNEL_OK")
</pallas_src>

<mosaic_0001>
module attributes {stable_mosaic.version = 11 : i64} {
  func.func @lstm_cell_kernel(%arg0: i32, %arg1: memref<8x128xf32, #tpu.memory_space<vmem>>, %arg2: memref<128x512xf32, #tpu.memory_space<vmem>>, %arg3: memref<1x512xf32, #tpu.memory_space<vmem>>, %arg4: memref<8x128xf32, #tpu.memory_space<vmem>>, %arg5: memref<8x128xf32, #tpu.memory_space<vmem>>, %arg6: memref<8x128xf32, #tpu.memory_space<vmem>>) attributes {dimension_semantics = [#tpu.dimension_semantics<parallel>], iteration_bounds = array<i64: 1>, scalar_prefetch = 0 : i64, scratch_operands = 0 : i64, tpu.core_type = #tpu.core_type<tc>, window_params = [{transform_indices = @transform_0, window_bounds = array<i64: 8, 128>}, {pipeline_mode = #tpu.pipeline_mode<synchronous>, transform_indices = @transform_1, window_bounds = array<i64: 128, 512>}, {pipeline_mode = #tpu.pipeline_mode<synchronous>, transform_indices = @transform_2, window_bounds = array<i64: 1, 512>}, {transform_indices = @transform_3, window_bounds = array<i64: 8, 128>}, {transform_indices = @transform_4, window_bounds = array<i64: 8, 128>}, {transform_indices = @transform_5, window_bounds = array<i64: 8, 128>}]} {
    %c0 = arith.constant 0 : index
    %c0_0 = arith.constant 0 : index
    %0 = vector.load %arg1[%c0, %c0_0] : memref<8x128xf32, #tpu.memory_space<vmem>>, vector<8x128xf32>
    %c0_1 = arith.constant 0 : index
    %c0_2 = arith.constant 0 : index
    %1 = vector.load %arg2[%c0_1, %c0_2] : memref<128x512xf32, #tpu.memory_space<vmem>>, vector<128x512xf32>
    %cst = arith.constant dense<0.000000e+00> : vector<8x512xf32>
    %2 = tpu.matmul %0, %1, %cst {dimension_numbers = #tpu.dot_dimension_numbers<[1], [0], [0], [1], [0, 0, 1, 1], [], []>} : vector<8x128xf32>, vector<128x512xf32>, vector<8x512xf32> -> vector<8x512xf32>
    %c0_3 = arith.constant 0 : index
    %c0_4 = arith.constant 0 : index
    %3 = vector.load %arg3[%c0_3, %c0_4] : memref<1x512xf32, #tpu.memory_space<vmem>>, vector<1x512xf32>
    %4 = vector.broadcast %3 : vector<1x512xf32> to vector<8x512xf32>
    %5 = arith.addf %2, %4 : vector<8x512xf32>
    %6 = vector.extract_strided_slice %5 {offsets = [0, 0], sizes = [8, 128], strides = [1, 1]} : vector<8x512xf32> to vector<8x128xf32>
    %cst_5 = arith.constant 5.000000e-01 : f32
    %7 = vector.broadcast %cst_5 : f32 to vector<8x128xf32>
    %8 = arith.mulf %7, %6 : vector<8x128xf32>
    %9 = math.tanh %8 : vector<8x128xf32>
    %cst_6 = arith.constant 1.000000e+00 : f32
    %10 = vector.broadcast %cst_6 : f32 to vector<8x128xf32>
    %11 = arith.addf %9, %10 : vector<8x128xf32>
    %cst_7 = arith.constant 5.000000e-01 : f32
    %12 = vector.broadcast %cst_7 : f32 to vector<8x128xf32>
    %13 = arith.mulf %12, %11 : vector<8x128xf32>
    %14 = vector.extract_strided_slice %5 {offsets = [0, 128], sizes = [8, 128], strides = [1, 1]} : vector<8x512xf32> to vector<8x128xf32>
    %cst_8 = arith.constant 5.000000e-01 : f32
    %15 = vector.broadcast %cst_8 : f32 to vector<8x128xf32>
    %16 = arith.mulf %15, %14 : vector<8x128xf32>
    %17 = math.tanh %16 : vector<8x128xf32>
    %cst_9 = arith.constant 1.000000e+00 : f32
    %18 = vector.broadcast %cst_9 : f32 to vector<8x128xf32>
    %19 = arith.addf %17, %18 : vector<8x128xf32>
    %cst_10 = arith.constant 5.000000e-01 : f32
    %20 = vector.broadcast %cst_10 : f32 to vector<8x128xf32>
    %21 = arith.mulf %20, %19 : vector<8x128xf32>
    %22 = vector.extract_strided_slice %5 {offsets = [0, 256], sizes = [8, 128], strides = [1, 1]} : vector<8x512xf32> to vector<8x128xf32>
    %23 = math.tanh %22 : vector<8x128xf32>
    %24 = vector.extract_strided_slice %5 {offsets = [0, 384], sizes = [8, 128], strides = [1, 1]} : vector<8x512xf32> to vector<8x128xf32>
    %cst_11 = arith.constant 5.000000e-01 : f32
    %25 = vector.broadcast %cst_11 : f32 to vector<8x128xf32>
    %26 = arith.mulf %25, %24 : vector<8x128xf32>
    %27 = math.tanh %26 : vector<8x128xf32>
    %cst_12 = arith.constant 1.000000e+00 : f32
    %28 = vector.broadcast %cst_12 : f32 to vector<8x128xf32>
    %29 = arith.addf %27, %28 : vector<8x128xf32>
    %cst_13 = arith.constant 5.000000e-01 : f32
    %30 = vector.broadcast %cst_13 : f32 to vector<8x128xf32>
    %31 = arith.mulf %30, %29 : vector<8x128xf32>
    %c0_14 = arith.constant 0 : index
    %c0_15 = arith.constant 0 : index
    %32 = vector.load %arg4[%c0_14, %c0_15] : memref<8x128xf32, #tpu.memory_space<vmem>>, vector<8x128xf32>
    %33 = arith.mulf %32, %21 : vector<8x128xf32>
    %34 = arith.mulf %13, %23 : vector<8x128xf32>
    %35 = arith.addf %33, %34 : vector<8x128xf32>
    %36 = math.tanh %35 : vector<8x128xf32>
    %37 = arith.mulf %31, %36 : vector<8x128xf32>
    %c0_16 = arith.constant 0 : index
    %c0_17 = arith.constant 0 : index
    %38 = vector.load %arg6[%c0_16, %c0_17] : memref<8x128xf32, #tpu.memory_space<vmem>>, vector<8x128xf32>
    tpu.vector_store %arg6[%c0_16, %c0_17], %35 {strides = array<i32>} : memref<8x128xf32, #tpu.memory_space<vmem>>, vector<8x128xf32>,
    %c0_18 = arith.constant 0 : index
    %c0_19 = arith.constant 0 : index
    %39 = vector.load %arg5[%c0_18, %c0_19] : memref<8x128xf32, #tpu.memory_space<vmem>>, vector<8x128xf32>
    tpu.vector_store %arg5[%c0_18, %c0_19], %37 {strides = array<i32>} : memref<8x128xf32, #tpu.memory_space<vmem>>, vector<8x128xf32>,
    return
  }
  func.func @transform_0(%arg0: i32) -> (i32, i32) {
    %c0_i32 = arith.constant 0 : i32
    %c0_i32_0 = arith.constant 0 : i32
    return %arg0, %c0_i32 : i32, i32
  }
  func.func @transform_1(%arg0: i32) -> (i32, i32) {
    %c0_i32 = arith.constant 0 : i32
    %c0_i32_0 = arith.constant 0 : i32
    %c0_i32_1 = arith.constant 0 : i32
    return %c0_i32, %c0_i32_0 : i32, i32
  }
  func.func @transform_2(%arg0: i32) -> (i32, i32) {
    %c0_i32 = arith.constant 0 : i32
    %c0_i32_0 = arith.constant 0 : i32
    %c0_i32_1 = arith.constant 0 : i32
    return %c0_i32, %c0_i32_0 : i32, i32
  }
  func.func @transform_3(%arg0: i32) -> (i32, i32) {
    %c0_i32 = arith.constant 0 : i32
    %c0_i32_0 = arith.constant 0 : i32
    return %arg0, %c0_i32 : i32, i32
  }
  func.func @transform_4(%arg0: i32) -> (i32, i32) {
    %c0_i32 = arith.constant 0 : i32
    %c0_i32_0 = arith.constant 0 : i32
    return %arg0, %c0_i32 : i32, i32
  }
  func.func @transform_5(%arg0: i32) -> (i32, i32) {
    %c0_i32 = arith.constant 0 : i32
    %c0_i32_0 = arith.constant 0 : i32
    return %arg0, %c0_i32 : i32, i32
  }
}

</mosaic_0001>

<bundles_post_ra>
// kernel: tpu_custom_call.1
= control target key start
LH: loop header
LB: loop body
LE: loop exit
PB: predicated region body
PF: predicated region fallthrough
CT: control target
= control target key end

     0   :  { %11 = vsyncpa [#allocation3], 0  ;;  %s639_s0 = inlined_call_operand.hbm [shape: f32[8,128], index: 0, kind: input, shape index: {}]   ;;  %s640_s1 = inlined_call_operand.hbm [shape: f32[128,512], index: 1, kind: input, shape index: {}]   ;;  %s641_s2 = inlined_call_operand.hbm [shape: f32[1,512], index: 2, kind: input, shape index: {}]   ;;  %s642_s3 = inlined_call_operand.vmem [shape: f32[8,128], index: 3, kind: input, shape index: {}]   ;;  %s643_s4 = inlined_call_operand.hbm [shape: f32[8,128], index: 4, kind: output, shape index: {0}]   ;;  %s644_s5 = inlined_call_operand.hbm [shape: f32[8,128], index: 5, kind: output, shape index: {1}]  }
   0x1   :  { %12 = vsyncpa [#allocation6], 0 }
   0x2   :  { %13 = vsyncpa [#allocation4], 0 }
   0x3   :  { %14 = vsyncpa [#allocation10], 0  ;;  %s538_s18 = smov [#allocation5]   ;;  %s420_s22 = scalar_lea.hbm %s640_s1, 8192 }
   0x4   :  { %s30_s19 = sshll.u32 %s538_s18, 4  ;;  %p421_p0 = scmp.ne.s32.totalorder %s640_s1, %s420_s22  ;;  %s31_s19 = int_to_ptr.vmem [resolvable:$true] %s30_s19 }
   0x5   :  { %p424_p1 = scmp.lt.u32.totalorder %s420_s22, %s640_s1 }
   0x7   :  { %p426_p2 = pnand %p424_p1, %p421_p0 }
   0x9   :  { %429 = shalt.err (!%p426_p2)
}
   0xa   :  { %s430_s27 = scalar_lea.vmem %s31_s19, 8192  ;;  %p435_p4 = scmp.lt.s32.totalorder %s31_s19, %s31_s19 }
   0xb   :  { %p431_p3 = scmp.ne.s32.totalorder %s31_s19, %s430_s27  ;;  %p436_p5 = scmp.lt.s32.totalorder %s430_s27, %s430_s27 }
   0xd   :  { %p437_p6 = por %p436_p5, %p435_p4 }
   0xf   :  { %p438_p7 = pnand %p437_p6, %p431_p3 }
  0x11   :  { %441 = shalt.err (!%p438_p7)
}
  0x12   :  { %s539_s28 = smov 512   ;;  %s540_s29 = smov 32  }
  0x13   :  { %36 = dma.hbm_to_vmem [thread:$0]  %s640_s1, 8192, %s31_s19, [#allocation6], %s539_s28, %s539_s28, %s540_s29  }
  0x14   :  { %s541_s7 = smov [#allocation2]   ;;  %s542_s9 = smov [#allocation7]  }
  0x15   :  { %s21_s8 = sshll.u32 %s541_s7, 4  ;;  %s43_s10 = sshll.u32 %s542_s9, 4  ;;  %s22_s8 = int_to_ptr.vmem [resolvable:$true] %s21_s8  ;;  %s44_s10 = int_to_ptr.vmem [resolvable:$true] %s43_s10 }
  0x16   :  { %s442_s13 = scalar_lea.hbm %s639_s0, 128 }
  0x17   :  { %p443_p8 = scmp.ne.s32.totalorder %s639_s0, %s442_s13  ;;  %p446_p9 = scmp.lt.u32.totalorder %s442_s13, %s639_s0 }
  0x19   :  { %p448_p10 = pnand %p446_p9, %p443_p8 }
  0x1b   :  { %451 = shalt.err (!%p448_p10)
}
  0x1c   :  { %s452_s1 = scalar_lea.vmem %s22_s8, 128  ;;  %p457_p12 = scmp.lt.s32.totalorder %s22_s8, %s22_s8 }
  0x1d   :  { %p453_p11 = scmp.ne.s32.totalorder %s22_s8, %s452_s1  ;;  %p458_p13 = scmp.lt.s32.totalorder %s452_s1, %s452_s1 }
  0x1f   :  { %p459_p0 = por %p458_p13, %p457_p12 }
  0x21   :  { %p460_p1 = pnand %p459_p0, %p453_p11 }
  0x23   :  { %463 = shalt.err (!%p460_p1)
}
  0x24   :  { %24 = dma.hbm_to_vmem [thread:$0]  %s639_s0, 128, %s22_s8, [#allocation3]  }
  0x25   :  { %s464_s22 = scalar_lea.hbm %s641_s2, 64 }
  0x26   :  { %p465_p2 = scmp.ne.s32.totalorder %s641_s2, %s464_s22  ;;  %p468_p3 = scmp.lt.u32.totalorder %s464_s22, %s641_s2 }
  0x28   :  { %p470_p4 = pnand %p468_p3, %p465_p2 }
  0x2a   :  { %473 = shalt.err (!%p470_p4)
}
  0x2b   :  { %s474_s27 = scalar_lea.vmem %s44_s10, 64  ;;  %p479_p6 = scmp.lt.s32.totalorder %s44_s10, %s44_s10 }
  0x2c   :  { %p475_p5 = scmp.ne.s32.totalorder %s44_s10, %s474_s27  ;;  %p480_p7 = scmp.lt.s32.totalorder %s474_s27, %s474_s27 }
  0x2e   :  { %p481_p8 = por %p480_p7, %p479_p6 }
  0x30   :  { %p482_p9 = pnand %p481_p8, %p475_p5 }
  0x32   :  { %485 = shalt.err (!%p482_p9)
}
  0x33   :  { %46 = dma.hbm_to_vmem [thread:$0]  %s641_s2, 64, %s44_s10, [#allocation6]  }
  0x34   :  { %530 = dma.done.wait [#allocation3], 128  }
  0x35   :  { %531 = vsyncadd [#allocation3], 4294967168 }
  0x36   :  { %532 = dma.done.wait [#allocation6], 8256  }
  0x37   :  { %533 = vsyncadd [#allocation6], 4294959040  ;;  %v543_v0 = vmov 0.0   ;;  %v60_v1 = vld [vmem:[#allocation5 + $0x8] sm:$0xff]  ;;  %v59_v3 = vld [vmem:[#allocation5] sm:$0xff]  ;;  %s544_s30 = smov [#allocation9]  }
  0x38   :  { %209 = vmatprep.mubr.f32.mxu0 %v543_v0  ;;  %280 = vmatprep.mubr.f32.mxu1 %v543_v0  ;;  %v64_v2 = vld [vmem:[#allocation5 + $0x28] sm:$0xff]  ;;  %v63_v5 = vld [vmem:[#allocation5 + $0x20] sm:$0xff]  ;;  %v62_v12 = vld [vmem:[#allocation5 + $0x18] sm:$0xff]  ;;  %s324_s6 = sshll.u32 %s544_s30, 4  ;;  %s325_s6 = int_to_ptr.vmem [resolvable:$true] %s324_s6 }
  0x39   :  { %v338_v4 = vpack.c.bf16 %v64_v2, %v60_v1  ;;  %v68_v6 = vld [vmem:[#allocation5 + $0x48] sm:$0xff]  ;;  %v340_v8 = vpack.c.bf16 %v63_v5, %v59_v3  ;;  %v67_v10 = vld [vmem:[#allocation5 + $0x40] sm:$0xff]  ;;  %v66_v13 = vld [vmem:[#allocation5 + $0x38] sm:$0xff]  ;;  %s486_s7 = scalar_lea.vmem %s325_s6, 128  ;;  %p491_p11 = scmp.lt.s32.totalorder %s325_s6, %s325_s6 }
  0x3a   :  { %v72_v7 = vld [vmem:[#allocation5 + $0x68] sm:$0xff]  ;;  %v71_v11 = vld [vmem:[#allocation5 + $0x60] sm:$0xff]  ;;  %v61_v14 = vld [vmem:[#allocation5 + $0x10] sm:$0xff]  ;;  %v370_v17 = vpack.c.bf16 %v66_v13, %v62_v12  ;;  %p487_p10 = scmp.ne.s32.totalorder %s325_s6, %s486_s7  ;;  %p492_p12 = scmp.lt.s32.totalorder %s486_s7, %s486_s7 }
  0x3b   :  { %v342_v9 = vpack.c.bf16 %v72_v7, %v68_v6  ;;  %339 = vmatprep.subr.bf16.mxu0 %v338_v4  ;;  %v65_v15 = vld [vmem:[#allocation5 + $0x30] sm:$0xff]  ;;  %v344_v16 = vpack.c.bf16 %v71_v11, %v67_v10  ;;  %v76_v19 = vld [vmem:[#allocation5 + $0x88] sm:$0xff]  ;;  %v75_v21 = vld [vmem:[#allocation5 + $0x80] sm:$0xff] }
  0x3c   :  { %341 = vmatpush1.bf16.msra.mxu0 %v340_v8  ;;  %v372_v18 = vpack.c.bf16 %v65_v15, %v61_v14  ;;  %v80_v20 = vld [vmem:[#allocation5 + $0xa8] sm:$0xff]  ;;  %v79_v23 = vld [vmem:[#allocation5 + $0xa0] sm:$0xff]  ;;  %v70_v24 = vld [vmem:[#allocation5 + $0x58] sm:$0xff]  ;;  %371 = vmatprep.subr.bf16.mxu1 %v370_v17  ;;  %p493_p13 = por %p492_p12, %p491_p11 }
  0x3d   :  { %343 = vmatprep.subr.bf16.mxu0 %v342_v9  ;;  %v346_v22 = vpack.c.bf16 %v80_v20, %v76_v19  ;;  %v74_v25 = vld [vmem:[#allocation5 + $0x78] sm:$0xff]  ;;  %v69_v27 = vld [vmem:[#allocation5 + $0x50] sm:$0xff]  ;;  %v84_v29 = vld [vmem:[#allocation5 + $0xc8] sm:$0xff]  ;;  %v348_v32 = vpack.c.bf16 %v79_v23, %v75_v21 }
  0x3e   :  { %v374_v26 = vpack.c.bf16 %v74_v25, %v70_v24  ;;  %v73_v28 = vld [vmem:[#allocation5 + $0x70] sm:$0xff]  ;;  %373 = vmatpush1.bf16.msra.mxu1 %v372_v18  ;;  %v88_v31 = vld [vmem:[#allocation5 + $0xe8] sm:$0xff]  ;;  %v78_v33 = vld [vmem:[#allocation5 + $0x98] sm:$0xff]  ;;  %p494_p0 = pnand %p493_p13, %p487_p10 }
  0x3f   :  { %v376_v30 = vpack.c.bf16 %v73_v28, %v69_v27  ;;  %v82_v34 = vld [vmem:[#allocation5 + $0xb8] sm:$0xff]  ;;  %v77_v35 = vld [vmem:[#allocation5 + $0x90] sm:$0xff]  ;;  %v350_v36 = vpack.c.bf16 %v88_v31, %v84_v29  ;;  %v83_v37 = vld [vmem:[#allocation5 + $0xc0] sm:$0xff] }
  0x40   :  { %345 = vmatpush1.bf16.msra.mxu0 %v344_v16  ;;  %375 = vmatprep.subr.bf16.mxu1 %v374_v26  ;;  %v87_v38 = vld [vmem:[#allocation5 + $0xe0] sm:$0xff]  ;;  %v378_v39 = vpack.c.bf16 %v82_v34, %v78_v33  ;;  %v81_v40 = vld [vmem:[#allocation5 + $0xb0] sm:$0xff]  ;;  %v92_v41 = vld [vmem:[#allocation5 + $0x108] sm:$0xff]  ;;  %v125_v34 = vlaneseq }
  0x41   :  { %347 = vmatprep.subr.bf16.mxu0 %v346_v22  ;;  %v96_v42 = vld [vmem:[#allocation5 + $0x128] sm:$0xff]  ;;  %v86_v43 = vld [vmem:[#allocation5 + $0xd8] sm:$0xff]  ;;  %v380_v44 = vpack.c.bf16 %v81_v40, %v77_v35  ;;  %v352_v46 = vpack.c.bf16 %v87_v38, %v83_v37  ;;  %v91_v47 = vld [vmem:[#allocation5 + $0x100] sm:$0xff] }
  0x42   :  { %377 = vmatpush1.bf16.msra.mxu1 %v376_v30  ;;  %v90_v45 = vld [vmem:[#allocation5 + $0xf8] sm:$0xff]  ;;  %v85_v49 = vld [vmem:[#allocation5 + $0xd0] sm:$0xff]  ;;  %v354_v51 = vpack.c.bf16 %v96_v42, %v92_v41  ;;  %v95_v52 = vld [vmem:[#allocation5 + $0x120] sm:$0xff]  ;;  %v126_v35 = vshrl.u32 %v125_v34, 7 }
  0x43   :  { %379 = vmatprep.subr.bf16.mxu1 %v378_v39  ;;  %v382_v48 = vpack.c.bf16 %v90_v45, %v86_v43  ;;  %v89_v50 = vld [vmem:[#allocation5 + $0xf0] sm:$0xff]  ;;  %v94_v53 = vld [vmem:[#allocation5 + $0x118] sm:$0xff]  ;;  %v100_v55 = vld [vmem:[#allocation5 + $0x148] sm:$0xff]  ;;  %v356_v58 = vpack.c.bf16 %v95_v52, %v91_v47 }
  0x44   :  { %349 = vmatpush1.bf16.msra.mxu0 %v348_v32  ;;  %v98_v54 = vld [vmem:[#allocation5 + $0x138] sm:$0xff]  ;;  %v104_v56 = vld [vmem:[#allocation5 + $0x168] sm:$0xff]  ;;  %v384_v57 = vpack.c.bf16 %v89_v50, %v85_v49  ;;  %v99_v59 = vld [vmem:[#allocation5 + $0x140] sm:$0xff]  ;;  %v131_v38 = vsub.s32 1, %v126_v35  ;;  %v135_v39 = vsub.s32 2, %v126_v35 }
  0x45   :  { %351 = vmatprep.subr.bf16.mxu0 %v350_v36  ;;  %v386_v60 = vpack.c.bf16 %v98_v54, %v94_v53  ;;  %v93_v61 = vld [vmem:[#allocation5 + $0x110] sm:$0xff]  ;;  %v358_v63 = vpack.c.bf16 %v104_v56, %v100_v55  ;;  %v103_v0 = vld [vmem:[#allocation5 + $0x160] sm:$0xff]  ;;  %v102_v1 = vld [vmem:[#allocation5 + $0x158] sm:$0xff]  ;;  %v127_v36 = vsub.s32 0, %v126_v35 }
  0x46   :  { %381 = vmatpush1.bf16.msra.mxu1 %v380_v44  ;;  %v97_v62 = vld [vmem:[#allocation5 + $0x130] sm:$0xff]  ;;  %v106_v2 = vld [vmem:[#allocation5 + $0x178] sm:$0xff]  ;;  %v108_v3 = vld [vmem:[#allocation5 + $0x188] sm:$0xff]  ;;  %v360_v6 = vpack.c.bf16 %v103_v0, %v99_v59 }
  0x47   :  { %383 = vmatprep.subr.bf16.mxu1 %v382_v48  ;;  %v112_v4 = vld [vmem:[#allocation5 + $0x1a8] sm:$0xff]  ;;  %v388_v5 = vpack.c.bf16 %v97_v62, %v93_v61  ;;  %v107_v7 = vld [vmem:[#allocation5 + $0x180] sm:$0xff]  ;;  %v390_v8 = vpack.c.bf16 %v106_v2, %v102_v1  ;;  %v101_v9 = vld [vmem:[#allocation5 + $0x150] sm:$0xff] }
  0x48   :  { %353 = vmatpush1.bf16.msra.mxu0 %v352_v46  ;;  %v105_v10 = vld [vmem:[#allocation5 + $0x170] sm:$0xff]  ;;  %v362_v11 = vpack.c.bf16 %v112_v4, %v108_v3  ;;  %v111_v12 = vld [vmem:[#allocation5 + $0x1a0] sm:$0xff]  ;;  %v110_v13 = vld [vmem:[#allocation5 + $0x198] sm:$0xff]  ;;  %v139_v46 = vsub.s32 3, %v126_v35 }
  0x49   :  { %355 = vmatprep.subr.bf16.mxu0 %v354_v51  ;;  %v114_v14 = vld [vmem:[#allocation5 + $0x1b8] sm:$0xff]  ;;  %v116_v15 = vld [vmem:[#allocation5 + $0x1c8] sm:$0xff]  ;;  %v392_v17 = vpack.c.bf16 %v105_v10, %v101_v9  ;;  %v364_v18 = vpack.c.bf16 %v111_v12, %v107_v7  ;;  %v115_v19 = vld [vmem:[#allocation5 + $0x1c0] sm:$0xff] }
  0x4a   :  { %385 = vmatpush1.bf16.msra.mxu1 %v384_v57  ;;  %v120_v16 = vld [vmem:[#allocation5 + $0x1e8] sm:$0xff]  ;;  %v394_v20 = vpack.c.bf16 %v114_v14, %v110_v13  ;;  %v109_v21 = vld [vmem:[#allocation5 + $0x190] sm:$0xff]  ;;  %v119_v24 = vld [vmem:[#allocation5 + $0x1e0] sm:$0xff] }
  0x4b   :  { %387 = vmatprep.subr.bf16.mxu1 %v386_v60  ;;  %v113_v22 = vld [vmem:[#allocation5 + $0x1b0] sm:$0xff]  ;;  %v366_v23 = vpack.c.bf16 %v120_v16, %v116_v15  ;;  %v118_v25 = vld [vmem:[#allocation5 + $0x1d8] sm:$0xff]  ;;  %v368_v28 = vpack.c.bf16 %v119_v24, %v115_v19  ;;  %v123_v37 = vld [vmem:[#allocation7] sm:$0xf] }
  0x4c   :  { %357 = vmatpush1.bf16.msra.mxu0 %v356_v58  ;;  %v122_v26 = vld [vmem:[#allocation5 + $0x1f8] sm:$0xff]  ;;  %v396_v27 = vpack.c.bf16 %v113_v22, %v109_v21  ;;  %v117_v30 = vld [vmem:[#allocation5 + $0x1d0] sm:$0xff]  ;;  %v128_v40 = vrot.slane %v123_v37, %v127_v36  ;;  %v132_v41 = vrot.slane %v123_v37, %v131_v38  ;;  %v136_v43 = vrot.slane %v123_v37, %v135_v39 }
  0x4d   :  { %359 = vmatprep.subr.bf16.mxu0 %v358_v63  ;;  %v398_v29 = vpack.c.bf16 %v122_v26, %v118_v25  ;;  %v121_v31 = vld [vmem:[#allocation5 + $0x1f0] sm:$0xff]  ;;  %v58_v33 = vld [vmem:[#allocation2] sm:$0xff]  ;;  %v140_v53 = vrot.slane %v123_v37, %v139_v46 }
  0x4e   :  { %389 = vmatpush1.bf16.msra.mxu1 %v388_v5  ;;  %v400_v32 = vpack.c.bf16 %v121_v31, %v117_v30  ;;  %v300_v62 = vld [vmem:[%s642_s3] sm:$0xff] }
  0x4f   :  { %391 = vmatprep.subr.bf16.mxu1 %v390_v8 }
  0x50   :  { %361 = vmatpush1.bf16.msra.mxu0 %v360_v6 }
  0x51   :  { %363 = vmatprep.subr.bf16.mxu0 %v362_v11 }
  0x52   :  { %393 = vmatpush1.bf16.msra.mxu1 %v392_v17 }
  0x53   :  { %395 = vmatprep.subr.bf16.mxu1 %v394_v20 }
  0x54   :  { %365 = vmatpush1.bf16.msra.mxu0 %v364_v18 }
  0x55   :  { %367 = vmatprep.subr.bf16.mxu0 %v366_v23 }
  0x56   :  { %397 = vmatpush1.bf16.msra.mxu1 %v396_v27 }
  0x57   :  { %399 = vmatprep.subr.bf16.mxu1 %v398_v29 }
  0x58   :  { %369 = vmatpush1.bf16.msra.mxu0 %v368_v28 }
  0x5a   :  { %401 = vmatpush1.bf16.msra.mxu1 %v400_v32 }
  0x5b   :  { %210 = vmatmul.mubr.f32.vlgmr.msra.gmra.mrb[0].mxu0 %v58_v33 }
  0x5d   :  { %281 = vmatmul.mubr.f32.vlgmr.msra.gmra.mrb[0].mxu1 %v58_v33 }
 0x12e   :  { %v211_v42 = vpop.f32.mrb[0].mxu0 }
 0x12f   :  { %v212_v44 = vadd.f32 %v211_v42, %v128_v40  ;;  %v213_v45 = vpop.f32.mrb[1].mxu0 }
 0x130   :  { %v214_v47 = vadd.f32 %v213_v45, %v132_v41  ;;  %v282_v49 = vpop.f32.mrb[0].mxu1 }
 0x131   :  { %v287_v48 = vmul.f32 0.5, %v212_v44  ;;  %v283_v51 = vadd.f32 %v282_v49, %v136_v43  ;;  %v284_v52 = vpop.f32.mrb[1].mxu1 }
 0x132   :  { %v291_v50 = vmul.f32 0.5, %v214_v47  ;;  %v285_v54 = vadd.f32 %v284_v52, %v140_v53 }
 0x133   :  { %410 = vtanh.f32 %v287_v48 }
 0x134   :  { %412 = vtanh.f32 %v291_v50  ;;  %v296_v55 = vmul.f32 0.5, %v285_v54 }
 0x135   :  { %414 = vtanh.f32 %v283_v51 }
 0x136   :  { %416 = vtanh.f32 %v296_v55 }
 0x13d   :  { %v411_v56 = vpop.eup %410 }
 0x13e   :  { %v413_v57 = vpop.eup %412  ;;  %v289_v58 = vadd.f32 1.0, %v411_v56 }
 0x13f   :  { %v415_v59 = vpop.eup %414  ;;  %v293_v60 = vadd.f32 1.0, %v413_v57 }
 0x140   :  { %v290_v61 = vmul.f32 0.5, %v289_v58 }
 0x141   :  { %v294_v63 = vmul.f32 0.5, %v293_v60 }
 0x142   :  { %v302_v0 = vmul.f32 %v415_v59, %v290_v61 }
 0x143   :  { %v301_v1 = vmul.f32 %v300_v62, %v294_v63 }
 0x145   :  { %v303_v2 = vadd.f32 %v302_v0, %v301_v1 }
 0x147   :  { %306 = vst [vmem:[#allocation9] sm:$0xff] %v303_v2  ;;  %418 = vtanh.f32 %v303_v2 }
 0x148   :  { %497 = shalt.err (!%p494_p0)
}
 0x149   :  { %s498_s3 = scalar_lea.hbm %s644_s5, 128 }
 0x14a   :  { %p499_p1 = scmp.ne.s32.totalorder %s644_s5, %s498_s3  ;;  %p502_p2 = scmp.lt.u32.totalorder %s498_s3, %s644_s5 }
 0x14c   :  { %p504_p3 = pnand %p502_p2, %p499_p1 }
 0x14e   :  { %507 = shalt.err (!%p504_p3)
}
 0x14f   :  { %327 = dma.vmem_to_hbm [thread:$0]  %s325_s6, 128, %s644_s5, [#allocation10]   ;;  %v417_v3 = vpop.eup %416 }
 0x150   :  { %v298_v4 = vadd.f32 1.0, %v417_v3  ;;  %s545_s16 = smov [#allocation8]  }
 0x151   :  { %s314_s17 = sshll.u32 %s545_s16, 4  ;;  %v419_v6 = vpop.eup %418  ;;  %s315_s17 = int_to_ptr.vmem [resolvable:$true] %s314_s17 }
 0x152   :  { %v299_v5 = vmul.f32 0.5, %v298_v4  ;;  %s508_s1 = scalar_lea.vmem %s315_s17, 128  ;;  %p513_p5 = scmp.lt.s32.totalorder %s315_s17, %s315_s17 }
 0x153   :  { %p509_p4 = scmp.ne.s32.totalorder %s315_s17, %s508_s1  ;;  %p514_p6 = scmp.lt.s32.totalorder %s508_s1, %s508_s1 }
 0x154   :  { %v305_v7 = vmul.f32 %v419_v6, %v299_v5 }
 0x155   :  { %p515_p7 = por %p514_p6, %p513_p5 }
 0x156   :  { %307 = vst [vmem:[#allocation8] sm:$0xff] %v305_v7 }
 0x157   :  { %p516_p8 = pnand %p515_p7, %p509_p4 }
 0x159   :  { %519 = shalt.err (!%p516_p8)
}
 0x15a   :  { %s520_s5 = scalar_lea.hbm %s643_s4, 128 }
 0x15b   :  { %p521_p9 = scmp.ne.s32.totalorder %s643_s4, %s520_s5  ;;  %p524_p10 = scmp.lt.u32.totalorder %s520_s5, %s643_s4 }
 0x15d   :  { %p526_p11 = pnand %p524_p10, %p521_p9 }
 0x15f   :  { %529 = shalt.err (!%p526_p11)
}
 0x160   :  { %317 = dma.vmem_to_hbm [thread:$0]  %s315_s17, 128, %s643_s4, [#allocation4]  }
 0x161   :  { %534 = dma.done.wait [#allocation4], 128  }
 0x162   :  { %535 = vsyncadd [#allocation4], 4294967168 }
 0x163   :  { %536 = dma.done.wait [#allocation10], 128  }
 0x164   :  { %537 = vsyncadd [#allocation10], 4294967168 }
 0x165   :  { %334 = vsyncpa [#allocation3], 1 }
 0x166   :  { %335 = vsyncpa [#allocation6], 1 }
 0x167   :  { %336 = vsyncpa [#allocation4], 1 }
 0x168   :  { %337 = vsyncpa [#allocation10], 1 }

</bundles_post_ra>
